<compile_context>
chip_gen: v6e
topology: v6e:2x2x1
jax: 0.10.0
libtpu: 0.0.40
codegen_flags: <defaults>
</compile_context>

<pallas_src>
import jax
import jax.numpy as jnp
from jax.experimental import pallas as pl
from jax.experimental.pallas import tpu as pltpu


def _round_up(x, m):
    return ((x + m - 1) // m) * m


def _pad_to(x, target_shape):
    pads = [(0, t - s) for s, t in zip(x.shape, target_shape)]
    if any(hi for _, hi in pads):
        x = jnp.pad(x, pads)
    return x


def _vmem_capacity_bytes():
    try:
        info = pltpu.get_tpu_info()
        cap = getattr(info, "vmem_capacity_bytes", None)
        if cap:
            return int(cap)
    except Exception:
        pass
    return 64 << 20  # conservative (v7x-safe) fallback


def _linear_kernel(seq_ref, w_ref, fts_ref):
    # fts_tile = seq_tile @ W.  seq streams in its HBM dtype (f32) and is cast in-vreg.
    # seq_ref: (TK, IN_p)   w_ref: (IN_p, OUT_p) bf16   fts_ref: (TK, OUT_p) bf16
    s = seq_ref[...].astype(w_ref.dtype)
    fts_ref[...] = jnp.dot(
        s, w_ref[...], preferred_element_type=jnp.float32
    ).astype(fts_ref.dtype)


def _aggregate_kernel(adj_ref, fts_ref, bias_ref, alpha_ref, out_ref, acc_ref):
    # acc += adj_tile @ fts_tile over the K axis; bias + PReLU on the last K step.
    # adj_ref: (TM, TK) f32 (cast to bf16 in-vreg)   fts_ref: (TK, OUT_p) bf16
    # bias_ref: (1, OUT_p) f32   alpha_ref: (1,) f32 SMEM
    # out_ref: (TM, OUT_p) f32   acc_ref: (TM, OUT_p) f32 VMEM scratch
    k = pl.program_id(2)

    @pl.when(k == 0)
    def _():
        acc_ref[...] = jnp.zeros_like(acc_ref)

    a = adj_ref[...].astype(fts_ref.dtype)
    acc_ref[...] += jnp.dot(a, fts_ref[...], preferred_element_type=jnp.float32)

    @pl.when(k == pl.num_programs(2) - 1)
    def _():
        out = acc_ref[...] + bias_ref[...]
        alpha = alpha_ref[0]
        out_ref[...] = jnp.where(out >= 0.0, out, alpha * out).astype(out_ref.dtype)


def gcn_forward(seq, adj, weight, bias, prelu_alpha, *,
                tile_m=None, tile_k=None, use_bf16=True):
    """
    seq:         [bs, n_node, in_ft]   float32
    adj:         [bs, n_node, n_node]  float32 (or pre-cast bf16 if reused across layers)
    weight:      [out_ft, in_ft]       float32  (PyTorch nn.Linear layout)
    bias:        [out_ft]              float32
    prelu_alpha: scalar                float32
    returns:     [bs, n_node, out_ft]  float32
    """
    bs, n_node, in_ft = seq.shape
    out_ft = weight.shape[0]
    assert adj.shape == (bs, n_node, n_node)

    compute_dtype = jnp.bfloat16 if use_bf16 else jnp.float32
    cbytes = jnp.dtype(compute_dtype).itemsize
    adj_bytes = jnp.dtype(adj.dtype).itemsize
    seq_bytes = jnp.dtype(seq.dtype).itemsize

    # Lane-dense feature widths.
    in_p = _round_up(in_ft, 128)
    out_p = _round_up(out_ft, 128)

    vmem_cap = _vmem_capacity_bytes()
    budget = int(vmem_cap * 0.7)

    # Row tile: 16-aligned (bf16 sublane pair); larger default on 128 MiB parts.
    if tile_m is None:
        tile_m = 512 if vmem_cap >= (96 << 20) else 256
    tile_m = min(_round_up(tile_m, 16), _round_up(n_node, 16))
    n_rows_p = _round_up(n_node, tile_m)
    num_row_tiles = n_rows_p // tile_m

    # Contraction dim: pad only to 16 unless K-tiling is required to bound VMEM.
    n_k = _round_up(n_node, 16)
    per_k_row = max(2 * tile_m * adj_bytes + 2 * out_p * cbytes,   # aggregate kernel
                    2 * in_p * seq_bytes + 2 * out_p * cbytes)     # linear kernel
    fixed = (3 * tile_m * out_p * 4           # out tile (double-buffered) + acc scratch
             + 2 * in_p * out_p * cbytes      # W (linear kernel)
             + 4 * out_p * 4                  # bias
             + (2 << 20))                     # headroom
    if tile_k is None:
        if fixed + per_k_row * n_k <= budget:
            tile_k = n_k
        else:
            tile_k = ((budget - fixed) // max(per_k_row, 1)) // 128 * 128
    if tile_k >= n_k:
        tile_k = n_k                                  # single K step, minimal col padding
    else:
        tile_k = max(128, (tile_k // 128) * 128)      # multi-step: 128-aligned blocks
    n_k_p = _round_up(n_k, tile_k)
    num_k_tiles = n_k_p // tile_k

    # Zero padding is exact: padded adj rows/cols are zero, padded seq rows/feats are
    # zero, padded W rows/cols are zero, padded output rows/cols are sliced off below.
    # For aligned inputs these pads are no-ops (no extra HBM pass over adj).
    seq_p = _pad_to(seq, (bs, n_k_p, in_p))               # dtype preserved (cast in-kernel)
    adj_p = _pad_to(adj, (bs, n_rows_p, n_k_p))           # dtype preserved (cast in-kernel)
    w_p = _pad_to(weight.T, (in_p, out_p)).astype(compute_dtype)   # (in, out) layout
    bias_p = _pad_to(jnp.asarray(bias, jnp.float32).reshape(1, out_ft), (1, out_p))
    alpha_1d = jnp.asarray(prelu_alpha, jnp.float32).reshape(1)

    # ---- Pass 1: fts = seq @ W (tiny vs the N^2 adj stream) --------------------------
    lin_ws = (2 * tile_k * in_p * seq_bytes + 2 * tile_k * out_p * cbytes
              + 2 * in_p * out_p * cbytes)
    lin_vmem = int(min(vmem_cap, max(16 << 20, 2 * lin_ws)))

    fts = pl.pallas_call(
        _linear_kernel,
        out_shape=jax.ShapeDtypeStruct((bs, n_k_p, out_p), compute_dtype),
        grid_spec=pltpu.PrefetchScalarGridSpec(
            num_scalar_prefetch=0,
            grid=(bs, num_k_tiles),
            in_specs=[
                pl.BlockSpec((pl.Squeezed(), tile_k, in_p), lambda b, r: (b, r, 0)),
                pl.BlockSpec((in_p, out_p), lambda b, r: (0, 0)),
            ],
            out_specs=pl.BlockSpec((pl.Squeezed(), tile_k, out_p),
                                   lambda b, r: (b, r, 0)),
        ),
        compiler_params=pltpu.CompilerParams(
            dimension_semantics=("parallel", "parallel"),
            vmem_limit_bytes=lin_vmem,
        ),
    )(seq_p, w_p)

    # ---- Pass 2: out = prelu(adj @ fts + bias), row/batch axes fully parallel --------
    main_ws = (2 * tile_m * tile_k * adj_bytes + 2 * tile_k * out_p * cbytes
               + 2 * tile_m * out_p * 4 + tile_m * out_p * 4 + 2 * out_p * 4)
    main_vmem = int(min(vmem_cap, max(16 << 20, 2 * main_ws)))

    out_padded = pl.pallas_call(
        _aggregate_kernel,
        out_shape=jax.ShapeDtypeStruct((bs, n_rows_p, out_p), jnp.float32),
        grid_spec=pltpu.PrefetchScalarGridSpec(
            num_scalar_prefetch=0,
            grid=(bs, num_row_tiles, num_k_tiles),
            in_specs=[
                pl.BlockSpec((pl.Squeezed(), tile_m, tile_k),
                             lambda b, r, k: (b, r, k)),                     # adj tile
                pl.BlockSpec((pl.Squeezed(), tile_k, out_p),
                             lambda b, r, k: (b, k, 0)),                     # fts tile
                pl.BlockSpec((1, out_p), lambda b, r, k: (0, 0)),            # bias
                pl.BlockSpec(memory_space=pltpu.MemorySpace.SMEM),           # alpha
            ],
            out_specs=pl.BlockSpec((pl.Squeezed(), tile_m, out_p),
                                   lambda b, r, k: (b, r, 0)),
            scratch_shapes=[pltpu.VMEM((tile_m, out_p), jnp.float32)],
        ),
        compiler_params=pltpu.CompilerParams(
            dimension_semantics=("parallel", "parallel", "arbitrary"),
            vmem_limit_bytes=main_vmem,
        ),
    )(adj_p, fts, bias_p, alpha_1d)

    return out_padded[:, :n_node, :out_ft]


if __name__ == "__main__":
    def reference(seq, adj, weight, bias, alpha):
        fts = jnp.einsum("bnf,of->bno", seq, weight,
                         precision=jax.lax.Precision.HIGHEST)
        out = jnp.einsum("bnm,bmo->bno", adj, fts,
                         precision=jax.lax.Precision.HIGHEST) + bias
        return jnp.where(out >= 0.0, out, alpha * out)

    key = jax.random.PRNGKey(0)

    # Case 1: single row tile, single K step.
    # Case 2: in_ft padded > out_ft padded, 2 row tiles, single K step.
    # Case 3: forces multi-K accumulation (tile_k=128 < n_k) plus row/col padding.
    cases = [
        # (bs, n_node, in_ft, out_ft, tile_m, tile_k)
        (2, 16, 8, 32, 16, None),
        (2, 24, 160, 32, 16, None),
        (2, 200, 48, 24, 64, 128),
    ]

    for bs, n_node, in_ft, out_ft, tile_m, tile_k in cases:
        key, k_seq, k_adj, k_w = jax.random.split(key, 4)
        seq = jax.random.normal(k_seq, (bs, n_node, in_ft), dtype=jnp.float32)
        adj = jax.random.uniform(k_adj, (bs, n_node, n_node), dtype=jnp.float32)

        # Deterministic params matching module __init__:
        #   Linear weight xavier_uniform_, bias zeros, PReLU alpha = 0.25 (PyTorch default).
        limit = (6.0 / (in_ft + out_ft)) ** 0.5
        weight = jax.random.uniform(k_w, (out_ft, in_ft), dtype=jnp.float32,
                                    minval=-limit, maxval=limit)
        bias = jnp.zeros((out_ft,), dtype=jnp.float32)
        prelu_alpha = jnp.float32(0.25)

        out = gcn_forward(seq, adj, weight, bias, prelu_alpha,
                          tile_m=tile_m, tile_k=tile_k)
        out = jax.block_until_ready(out)

        ref = reference(seq, adj, weight, bias, prelu_alpha)
        assert out.shape == (bs, n_node, out_ft)
        # bf16 MXU inputs (f32 accumulation) -> loosened tolerance vs the f32 reference.
        max_err = jnp.max(jnp.abs(out - ref))
        assert jnp.allclose(out, ref, atol=2e-1, rtol=5e-2), f"max abs err {max_err}"

    print("KERNEL_OK")
</pallas_src>

<mosaic_0001>
module attributes {stable_mosaic.version = 11 : i64} {
  func.func @_linear_kernel(%arg0: i32, %arg1: i32, %arg2: memref<1x16x128xf32, #tpu.memory_space<vmem>>, %arg3: memref<128x128xbf16, #tpu.memory_space<vmem>>, %arg4: memref<1x16x128xbf16, #tpu.memory_space<vmem>>) attributes {dimension_semantics = [#tpu.dimension_semantics<parallel>, #tpu.dimension_semantics<parallel>], iteration_bounds = array<i64: 2, 1>, scalar_prefetch = 0 : i64, scratch_operands = 0 : i64, tpu.core_type = #tpu.core_type<tc>, window_params = [{transform_indices = @transform_0, window_bounds = array<i64: 1, 16, 128>}, {pipeline_mode = #tpu.pipeline_mode<synchronous>, transform_indices = @transform_1, window_bounds = array<i64: 128, 128>}, {transform_indices = @transform_2, window_bounds = array<i64: 1, 16, 128>}]} {
    %c0 = arith.constant 0 : index
    %c0_0 = arith.constant 0 : index
    %c0_1 = arith.constant 0 : index
    %0 = vector.load %arg2[%c0, %c0_0, %c0_1] : memref<1x16x128xf32, #tpu.memory_space<vmem>>, vector<1x16x128xf32>
    %1 = vector.shape_cast %0 : vector<1x16x128xf32> to vector<16x128xf32>
    %2 = arith.truncf %1 : vector<16x128xf32> to vector<16x128xbf16>
    %c0_2 = arith.constant 0 : index
    %c0_3 = arith.constant 0 : index
    %3 = vector.load %arg3[%c0_2, %c0_3] : memref<128x128xbf16, #tpu.memory_space<vmem>>, vector<128x128xbf16>
    %cst = arith.constant dense<0.000000e+00> : vector<16x128xf32>
    %4 = tpu.matmul %2, %3, %cst {dimension_numbers = #tpu.dot_dimension_numbers<[1], [0], [0], [1], [0, 0, 1, 1], [], []>} : vector<16x128xbf16>, vector<128x128xbf16>, vector<16x128xf32> -> vector<16x128xf32>
    %5 = arith.truncf %4 : vector<16x128xf32> to vector<16x128xbf16>
    %c0_4 = arith.constant 0 : index
    %c0_5 = arith.constant 0 : index
    %c0_6 = arith.constant 0 : index
    %6 = vector.load %arg4[%c0_4, %c0_5, %c0_6] : memref<1x16x128xbf16, #tpu.memory_space<vmem>>, vector<1x16x128xbf16>
    %7 = vector.shape_cast %6 : vector<1x16x128xbf16> to vector<16x128xbf16>
    %8 = vector.shape_cast %5 : vector<16x128xbf16> to vector<1x16x128xbf16>
    tpu.vector_store %arg4[%c0_4, %c0_5, %c0_6], %8 {strides = array<i32>} : memref<1x16x128xbf16, #tpu.memory_space<vmem>>, vector<1x16x128xbf16>,
    return
  }
  func.func @transform_0(%arg0: i32, %arg1: i32) -> (i32, i32, i32) {
    %c0_i32 = arith.constant 0 : i32
    %c0_i32_0 = arith.constant 0 : i32
    return %arg0, %arg1, %c0_i32 : i32, i32, i32
  }
  func.func @transform_1(%arg0: i32, %arg1: i32) -> (i32, i32) {
    %c0_i32 = arith.constant 0 : i32
    %c0_i32_0 = arith.constant 0 : i32
    %c0_i32_1 = arith.constant 0 : i32
    return %c0_i32, %c0_i32_0 : i32, i32
  }
  func.func @transform_2(%arg0: i32, %arg1: i32) -> (i32, i32, i32) {
    %c0_i32 = arith.constant 0 : i32
    %c0_i32_0 = arith.constant 0 : i32
    return %arg0, %arg1, %c0_i32 : i32, i32, i32
  }
}

</mosaic_0001>

<bundles_post_ra>
// kernel: tpu_custom_call.1
= control target key start
LH: loop header
LB: loop body
LE: loop exit
PB: predicated region body
PF: predicated region fallthrough
CT: control target
= control target key end

     0   :  { %7 = vsyncpa [#allocation3], 0  ;;  %s935_s0 = inlined_call_operand.hbm [shape: f32[2,16,128], index: 0, kind: input, shape index: {}]   ;;  %s936_s1 = inlined_call_operand.hbm [shape: bf16[128,128], index: 1, kind: input, shape index: {}]   ;;  %s937_s2 = inlined_call_operand.hbm [shape: bf16[2,16,128], index: 2, kind: output, shape index: {}]  }
   0x1   :  { %9 = vsyncpa [#allocation3 + $0x1], 0 }
   0x2   :  { %10 = vsyncpa [#allocation6], 0 }
   0x3   :  { %11 = vsyncpa [#allocation4], 0 }
   0x4   :  { %13 = vsyncpa [#allocation4 + $0x1], 0  ;;  %s749_s9 = smov 0   ;;  %s751_s10 = smov 0  }
   0x5   :  { %s753_s11 = smov 0   ;;  %s755_s12 = smov 0  }
   0x6   :  { %s757_s13 = smov 0   ;;  %s759_s14 = smov 0  }
   0x7 LB: > { %s429_s15 = sadd.s32 4294967295, %s721_s14   ;;  %s430_s16 = sadd.s32 4294967294, %s721_s14   ;;  %s721_s14 = sphi %s759_s14, %s19_s14   ;;  %s717_s13 = sphi %s757_s13, %s955_s13   ;;  %s713_s12 = sphi %s755_s12, %s954_s12   ;;  %s709_s11 = sphi %s753_s11, %s953_s11   ;;  %s705_s10 = sphi %s751_s10, %s952_s10   ;;  %s701_s9 = sphi %s749_s9, %s951_s9  }
   0x8   : > { %p53_p0 = scmp.ne.s32.totalorder %s705_s10, %s701_s9  ;;  %p783_p1 = scmp.eq.s32.totalorder %s429_s15, 0 }
   0x9   : > { %p787_p2 = scmp.eq.s32.totalorder %s429_s15, 1  ;;  %p106_p3 = scmp.eq.s32.totalorder %s430_s16, 1 }
   0xa   : > { %p793_p4 = por %p783_p1, %p53_p0  ;;  %p431_p5 = scmp.ge.s32.totalorder %s721_s14, 1 }
   0xb   : > { %p798_p6 = por %p106_p3, %p53_p0  ;;  %p113_p7 = scmp.lt.s32.totalorder %s721_s14, 3 }
   0xc   : > { %s941_s19 = scalar_select %p793_p4, 1, 0 }
   0xd   : > { %s942_s20 = scalar_select %p798_p6, 1, 0 }
   0xe   : > { %p803_p8 = pnand %p431_p5, %p113_p7  ;;  %s723_s22 = smov [#allocation5]  }
   0xf   : > { %s125_s23 = sshll.u32 %s723_s22, 4  ;;  %s31_s25 = sadd.s32 1, %s717_s13  ;;  %s126_s23 = int_to_ptr.vmem [resolvable:$true] %s125_s23 }
  0x10   : > { %p502_p9 = pneg %p803_p8  ;;  %s594_s26 = scalar_lea.vmem %s126_s23, 1024 }
  0x11   : > { %p595_p13 = scmp.ne.s32.totalorder %s126_s23, %s594_s26  ;;  %p602_p5 = scmp.lt.s32.totalorder %s126_s23, %s126_s23 }
  0x12   : > { %p812_p11 = pnand %p502_p9, %p783_p1  ;;  %p603_p7 = scmp.lt.s32.totalorder %s594_s26, %s594_s26 }
  0x14   : > { %p585_p12 = pneg %p812_p11  ;;  %p604_p6 = por %p603_p7, %p602_p5 }
  0x16   : > { %p597_p0 = pnand %p595_p13, %p585_p12 }
  0x18   : > { %p598_p3 = pneg %p597_p0 }
  0x1a   : > { %p605_p4 = pnand %p604_p6, %p598_p3 }
  0x1c   : > { %608 = shalt.err (!%p605_p4)
}
  0x1d   : > { %s724_s27 = smov 64   ;;  %s725_s28 = smov 4  }
  0x1e   : > { %505 = dma.hbm_to_vmem [thread:$0]  (!%p812_p11), %s936_s1, 1024, %s126_s23, [#allocation6], %s724_s27, %s724_s27, %s725_s28  }
  0x1f   : > { %p33_p6 = scmp.ge.s32.totalorder %s31_s25, 2  ;;  %s40_s3 = sadd.s32 1, %s709_s11 }
  0x20   : > { %p47_p4 = scmp.ne.s32.totalorder %s709_s11, %s705_s10  ;;  %p48_p9 = scmp.eq.s32.totalorder %s721_s14, 0 }
  0x21   : > { %s957_s25 = smov (%p33_p6, %s31_s25), 0  ;;  %p515_p0 = scmp.lt.s32.totalorder %s721_s14, 2 }
  0x22   : > { %p830_p12 = por %p48_p9, %p47_p4  ;;  %p836_p13 = por %p787_p2, %p47_p4 }
  0x23   : > { %s35_s6 = ssub.s32 %s717_s13, %s957_s25  ;;  %s139_s7 = sand.u32 1, %s709_s11  }
  0x24   : > { %p38_p11 = scmp.eq.s32.totalorder %s35_s6, 0  ;;  %s434_s8 = sshll.u32 %s139_s7, 4 }
  0x25   : > { %s456_s16 = sshll.u32 %s717_s13, 8  ;;  %s143_s26 = scalar_lea.vmem [#allocation2], %s434_s8 }
  0x26   : > { %s845_s15 = scalar_select %p38_p11, %s709_s11, %s40_s3  }
  0x27   : > { %s151_s24 = scalar_lea.hbm %s935_s0, %s456_s16  ;;  %s152_s27 = sshll.u32 %s143_s26, 4  ;;  %s153_s27 = int_to_ptr.vmem [resolvable:$true] %s152_s27 }
  0x28   : > { %p853_p2 = pnand %p515_p0, %p830_p12  ;;  %s140_s28 = scalar_lea.sflag [#allocation3], %s139_s7 }
  0x29   : > { %s622_s29 = scalar_lea.vmem %s153_s27, 256  ;;  %s726_s30 = smov [#allocation2]  }
  0x2a   : > { %p611_p3 = pneg %p853_p2  ;;  %p623_p5 = scmp.ne.s32.totalorder %s153_s27, %s622_s29 }
  0x2b   : > { %s627_s3 = sshll.u32 %s726_s30, 4  ;;  %s628_s3 = int_to_ptr.vmem [resolvable:$false] %s627_s3 }
  0x2c   : > { %p625_p7 = pnand %p623_p5, %p611_p3  ;;  %s629_s6 = scalar_lea.vmem %s628_s3, 512 }
  0x2d   : > { %p630_p4 = scmp.lt.s32.totalorder %s153_s27, %s628_s3  ;;  %p631_p9 = scmp.lt.s32.totalorder %s629_s6, %s622_s29 }
  0x2e   : > { %p626_p6 = pneg %p625_p7 }
  0x2f   : > { %p632_p11 = por %p631_p9, %p630_p4 }
  0x31   : > { %p633_p10 = pnand %p632_p11, %p626_p6 }
  0x33   : > { %636 = shalt.err (!%p633_p10)
}
  0x34   : > { %s727_s4 = smov 128   ;;  %s728_s8 = smov 8  }
  0x35   : > { %509 = dma.hbm_to_vmem [thread:$0]  (!%p853_p2), %s151_s24, 256, %s153_s27, %s140_s28, %s727_s4, %s727_s4, %s728_s8  }
  0x36   : > { %164 = sbr.rel (%p803_p8) target bundleno = 308 (0x134), region = 28  ;;  %s864_s7 = sand.u32 (!%p803_p8), 1, %s705_s10  }
  0x37   : > { %s438_s16 = sshll.u32 (!%p803_p8), %s864_s7, 4  ;;  %s167_s22 = scalar_lea.sflag (!%p803_p8), [#allocation3], %s864_s7 }
  0x38   : > { %s868_s23 = scalar_lea.vmem (!%p803_p8), [#allocation2], %s438_s16  ;;  %p948_p12 = scmp.ne.s32.totalorder (!%p803_p8), %s941_s19, 0 }
  0x3b   : > { %688 = dma.done.wait (%p948_p12), %s167_s22, 256  }
  0x3c   : > { %690 = vsyncadd (%p948_p12), %s167_s22, 4294967040 }
  0x3d   : > { %692 = dma.done.wait (%p783_p1), [#allocation6], 1024  }
  0x3e   : > { %694 = vsyncadd (%p783_p1), [#allocation6], 4294966272  ;;  %v729_v0 = vmov 0.0   ;;  %vm730_vm0 = vmmov 0   ;;  %v575_v1 = vld [vmem:[#allocation5 + $0x38] sm:$0xff]   ;;  %v576_v2 = vld [vmem:[#allocation5 + $0x30] sm:$0xff]  }
  0x3f   : > { %474 = vmatprep.subr.bf16.mxu0 %v729_v0  ;;  %490 = vmatprep.mubr.msk.bf16.mxu0 %vm730_vm0, %v729_v0  ;;  %v577_v3 = vld [vmem:[#allocation5 + $0x28] sm:$0xff]   ;;  %v578_v4 = vld [vmem:[#allocation5 + $0x20] sm:$0xff]   ;;  %v579_v5 = vld [vmem:[#allocation5 + $0x18] sm:$0xff]   ;;  %s440_s17 = sshll.u32 %s864_s7, 3  ;;  %s459_s24 = sshll.u32 %s713_s12, 7 }
  0x40   : > { %475 = vmatpush3.bf16.msra.mxu0 %v575_v1  ;;  %v580_v6 = vld [vmem:[#allocation5 + $0x10] sm:$0xff]   ;;  %v581_v7 = vld [vmem:[#allocation5 + $0x8] sm:$0xff]   ;;  %v582_v8 = vld [vmem:[#allocation5] sm:$0xff]   ;;  %s194_s19 = scalar_lea.vmem [#allocation7], %s440_s17  ;;  %s887_s18 = scalar_lea.hbm %s937_s2, %s459_s24 }
  0x41   : > { %476 = vmatprep.subr.bf16.mxu0 %v729_v0  ;;  %v198_v9 = vld [vmem:[%s868_s23] sm:$0xff]  ;;  %v199_v10 = vld [vmem:[%s868_s23 + $0x8] sm:$0xff]  ;;  %s332_s21 = sshll.u32 %s194_s19, 4  ;;  %s317_s28 = scalar_lea.sflag [#allocation4], %s864_s7  ;;  %s882_s21 = int_to_ptr.vmem [resolvable:$true] %s332_s21 }
  0x42   : > { %v200_v11 = vpack.c.bf16 %v199_v10, %v198_v9  ;;  %s637_s29 = scalar_lea.vmem %s882_s21, 128  ;;  %s731_s12 = smov [#allocation7]  }
  0x43   : > { %p638_p1 = scmp.ne.s32.totalorder %s882_s21, %s637_s29  ;;  %s641_s30 = sshll.u32 %s731_s12, 4  ;;  %s642_s30 = int_to_ptr.vmem [resolvable:$false] %s641_s30 }
  0x44   : > { %477 = vmatpush3.bf16.msra.mxu0 %v576_v2  ;;  %s643_s3 = scalar_lea.vmem %s642_s30, 256  ;;  %p644_p0 = scmp.lt.s32.totalorder %s882_s21, %s642_s30 }
  0x45   : > { %478 = vmatprep.subr.bf16.mxu0 %v729_v0  ;;  %p639_p8 = pnand %p638_p1, %p836_p13  ;;  %p645_p2 = scmp.lt.s32.totalorder %s643_s3, %s637_s29 }
  0x47   : > { %p640_p10 = pneg %p639_p8  ;;  %p646_p3 = por %p645_p2, %p644_p0 }
  0x48   : > { %479 = vmatpush3.bf16.msra.mxu0 %v577_v3 }
  0x49   : > { %480 = vmatprep.subr.bf16.mxu0 %v729_v0  ;;  %p647_p5 = pnand %p646_p3, %p640_p10 }
  0x4c   : > { %481 = vmatpush3.bf16.msra.mxu0 %v578_v4 }
  0x4d   : > { %482 = vmatprep.subr.bf16.mxu0 %v729_v0 }
  0x50   : > { %483 = vmatpush3.bf16.msra.mxu0 %v579_v5 }
  0x51   : > { %484 = vmatprep.subr.bf16.mxu0 %v729_v0 }
  0x54   : > { %485 = vmatpush3.bf16.msra.mxu0 %v580_v6 }
  0x55   : > { %486 = vmatprep.subr.bf16.mxu0 %v729_v0 }
  0x58   : > { %487 = vmatpush3.bf16.msra.mxu0 %v581_v7 }
  0x59   : > { %488 = vmatprep.subr.bf16.mxu0 %v729_v0 }
  0x5c   : > { %489 = vmatpush3.bf16.msra.mxu0 %v582_v8 }
  0x5f   : > { %491 = vmatmul.mubr.bf16.vlgmr.msra.gmra.mxu0 %v200_v11 }
 0x11f   : > { %v299_v12 = vpop.f32.mrf.mxu0 }
 0x121   : > { %v492_v13 = vpop.f32.mrf.mxu0 }
 0x123   : > { %v302_v14 = vpop.f32.mrf.mxu0 }
 0x124   : > { %v463_v15 = vpack.c.bf16 %v302_v14, %v299_v12 }
 0x125   : > { %v493_v16 = vpop.f32.mrf.mxu0 }
 0x126   : > { %464 = vst [vmem:[%s194_s19] sm:$0xff] %v463_v15  }
 0x127   : > { %650 = shalt.err (!%p647_p5)
}
 0x128   : > { %s651_s6 = scalar_lea.hbm %s887_s18, 128  ;;  %s655_s16 = scalar_lea.hbm %s937_s2, 256 }
 0x129   : > { %p652_p7 = scmp.ne.s32.totalorder %s887_s18, %s651_s6  ;;  %p656_p9 = scmp.lt.s32.totalorder %s887_s18, %s937_s2 }
 0x12a   : > { %p657_p11 = scmp.lt.s32.totalorder %s655_s16, %s651_s6 }
 0x12b   : > { %p653_p6 = pnand %p652_p7, %p836_p13 }
 0x12c   : > { %p658_p12 = por %p657_p11, %p656_p9 }
 0x12d   : > { %p654_p4 = pneg %p653_p6 }
 0x12f   : > { %p659_p1 = pnand %p658_p12, %p654_p4 }
 0x131   : > { %662 = shalt.err (!%p659_p1)
}
 0x132   : > { %s732_s17 = smov 64   ;;  %s733_s19 = smov 4  }
 0x133   : > { %500 = dma.vmem_to_hbm [thread:$0]  (%p836_p13), %s882_s21, 128, %s887_s18, %s317_s28, %s732_s17, %s732_s17, %s733_s19  }
 0x134 PF: > { %s347_s24 = sand.u32 1, %s701_s9   ;;  %p949_p8 = scmp.ne.s32.totalorder %s942_s20, 0 }
 0x135   : > { %p950_p10 = scmp.ge.s32.totalorder %s721_s14, 2  ;;  %s348_s26 = scalar_lea.sflag [#allocation4], %s347_s24 }
 0x137   : > { %p511_p0 = pnand %p950_p10, %p949_p8 }
 0x139   : > { %p512_p2 = pneg %p511_p0 }
 0x13b   : > { %696 = dma.done.wait (%p512_p2), %s348_s26, 128  }
 0x13c   : > { %698 = vsyncadd (%p512_p2), %s348_s26, 4294967168  ;;  %s19_s14 = sadd.s32 1, %s721_s14   ;;  %s951_s9 = smov %s705_s10 }
 0x13d   : > { %p16_p3 = scmp.ge.s32.totalorder %s19_s14, 4   ;;  %s952_s10 = smov %s709_s11 }
 0x13e   : > { %s953_s11 = smov %s845_s15  ;;  %s954_s12 = smov %s717_s13 }
 0x13f   : > { %s955_s13 = smov %s957_s25  ;;  %18 = sbr.rel (!%p16_p3) target bundleno = 7 (0x7), region = 77 }
 0x144   :  { %353 = vsyncpa [#allocation3], 1 }
 0x145   :  { %355 = vsyncpa [#allocation3 + $0x1], 1 }
 0x146   :  { %356 = vsyncpa [#allocation6], 1 }
 0x147   :  { %357 = vsyncpa [#allocation4], 1 }
 0x148   :  { %359 = vsyncpa [#allocation4 + $0x1], 1 }

</bundles_post_ra>
